<compile_context>
chip_gen: v7x
topology: tpu7x:2x2x1
jax: 0.10.0
libtpu: 0.0.40
codegen_flags: <defaults>
</compile_context>

<pallas_src>
import jax
import jax.numpy as jnp
from jax.experimental import pallas as pl
from jax.experimental.pallas import tpu as pltpu

latent_dim = 100
output_dim = 2


def _linear_bias_kernel(z_ref, wt_ref, b_ref, o_ref):
    # z_ref: (Bt, L)  wt_ref: (L, O)  b_ref: (1, O) f32  o_ref: (Bt, O)
    acc = jnp.dot(z_ref[...], wt_ref[...], preferred_element_type=jnp.float32)
    o_ref[...] = (acc + b_ref[...]).astype(o_ref.dtype)


def _cost(B, L, O):
    return pl.CostEstimate(
        flops=2 * B * L * O,
        transcendentals=0,
        bytes_accessed=4 * (B * L + L * O + O + B * O),
    )


def prepare_generator_params(w, b):
    """Hoisted out of forward: build the (L, O) weight and (1, O) f32 bias once
    (at init / after each optimizer step), not on every generation."""
    wt = jnp.asarray(w).T                       # (L, O), materialized once
    b2d = jnp.asarray(b, jnp.float32).reshape(1, -1)  # (1, O) f32 bias
    return wt, b2d


def _pick_tile(B, tile_b_max):
    # At least 2 balanced grid steps (keeps both v7x TensorCores busy under
    # dimension_semantics=("parallel",)); round to a sublane multiple; cap so
    # v5e/v6e still get large, per-step-overhead-amortizing tiles.
    half = -(-B // 2)
    half = -(-half // 8) * 8
    return min(tile_b_max, half)


def generator_forward(z, wt, b2d, *, gridless_max=1024, tile_b_max=8192):
    """Forward pass of Generator.fc.

    z: (B, latent_dim); wt: (latent_dim, output_dim) = W.T (from
    prepare_generator_params); b2d: (1, output_dim) f32.
    Returns (B, output_dim) = z @ W.T + b.
    """
    dt = z.dtype
    B, L = z.shape
    _, O = wt.shape

    if B <= gridless_max:
        # Small batch: no grid machinery at all; whole arrays resident in VMEM.
        return pl.pallas_call(
            _linear_bias_kernel,
            out_shape=jax.ShapeDtypeStruct((B, O), dt),
            in_specs=[
                pl.BlockSpec(memory_space=pltpu.MemorySpace.VMEM),
                pl.BlockSpec(memory_space=pltpu.MemorySpace.VMEM),
                pl.BlockSpec(memory_space=pltpu.MemorySpace.VMEM),
            ],
            out_specs=pl.BlockSpec(memory_space=pltpu.MemorySpace.VMEM),
            cost_estimate=_cost(B, L, O),
        )(z, wt, b2d)

    # Large batch: tile over the batch axis. Last block may be ragged; Pallas
    # discards out-of-bounds output rows on writeback, so no padding pass.
    tile_b = _pick_tile(B, tile_b_max)
    nb = pl.cdiv(B, tile_b)

    return pl.pallas_call(
        _linear_bias_kernel,
        out_shape=jax.ShapeDtypeStruct((B, O), dt),
        grid=(nb,),
        in_specs=[
            pl.BlockSpec((tile_b, L), lambda i: (i, 0)),
            pl.BlockSpec((L, O), lambda i: (0, 0)),
            pl.BlockSpec((1, O), lambda i: (0, 0)),
        ],
        out_specs=pl.BlockSpec((tile_b, O), lambda i: (i, 0)),
        compiler_params=pltpu.CompilerParams(dimension_semantics=("parallel",)),
        cost_estimate=_cost(B, L, O),
    )(z, wt, b2d)


def init_generator_params(key, latent_dim, output_dim):
    """nn.Linear default init: uniform(+/- 1/sqrt(fan_in)); W in (O, L) layout."""
    kw, kb = jax.random.split(key)
    bound = 1.0 / (latent_dim ** 0.5)
    w = jax.random.uniform(kw, (output_dim, latent_dim), jnp.float32, -bound, bound)
    b = jax.random.uniform(kb, (output_dim,), jnp.float32, -bound, bound)
    return w, b


if __name__ == "__main__":
    key = jax.random.PRNGKey(0)
    k_params, k_z, k_z2, k_z3 = jax.random.split(key, 4)

    w, b = init_generator_params(k_params, latent_dim, output_dim)
    wt, b2d = prepare_generator_params(w, b)  # hoisted out of forward

    # Small batch -> gridless, whole-arrays-in-VMEM path.
    batch = 8
    z = jax.random.normal(k_z, (batch, latent_dim), jnp.float32)
    out = jax.block_until_ready(generator_forward(z, wt, b2d))
    ref = z @ w.T + b
    assert out.shape == (batch, output_dim)
    assert jnp.allclose(out, ref, atol=1e-5, rtol=1e-5)

    # Larger batch -> batch-tiled "parallel" grid path (2 balanced tiles).
    batch2 = 2048
    z2 = jax.random.normal(k_z2, (batch2, latent_dim), jnp.float32)
    out2 = jax.block_until_ready(generator_forward(z2, wt, b2d))
    ref2 = z2 @ w.T + b
    assert out2.shape == (batch2, output_dim)
    assert jnp.allclose(out2, ref2, atol=1e-4, rtol=1e-5)

    # Awkward batch -> ragged last grid block, no zero-pad pass over z.
    batch3 = 1100
    z3 = jax.random.normal(k_z3, (batch3, latent_dim), jnp.float32)
    out3 = jax.block_until_ready(generator_forward(z3, wt, b2d))
    ref3 = z3 @ w.T + b
    assert out3.shape == (batch3, output_dim)
    assert jnp.allclose(out3, ref3, atol=1e-4, rtol=1e-5)

    print("KERNEL_OK")
</pallas_src>

<mosaic_0001>
module attributes {stable_mosaic.version = 11 : i64} {
  func.func @_linear_bias_kernel(%arg0: memref<8x100xf32, #tpu.memory_space<vmem>>, %arg1: memref<100x2xf32, #tpu.memory_space<vmem>>, %arg2: memref<1x2xf32, #tpu.memory_space<vmem>>, %arg3: memref<8x2xf32, #tpu.memory_space<vmem>>) attributes {dimension_semantics = [], scalar_prefetch = 0 : i64, scratch_operands = 0 : i64, tpu.core_type = #tpu.core_type<tc>} {
    %c0 = arith.constant 0 : index
    %c0_0 = arith.constant 0 : index
    %0 = vector.load %arg0[%c0, %c0_0] : memref<8x100xf32, #tpu.memory_space<vmem>>, vector<8x100xf32>
    %c0_1 = arith.constant 0 : index
    %c0_2 = arith.constant 0 : index
    %1 = vector.load %arg1[%c0_1, %c0_2] : memref<100x2xf32, #tpu.memory_space<vmem>>, vector<100x2xf32>
    %cst = arith.constant dense<0.000000e+00> : vector<8x2xf32>
    %2 = tpu.matmul %0, %1, %cst {dimension_numbers = #tpu.dot_dimension_numbers<[1], [0], [0], [1], [0, 0, 1, 1], [], []>} : vector<8x100xf32>, vector<100x2xf32>, vector<8x2xf32> -> vector<8x2xf32>
    %c0_3 = arith.constant 0 : index
    %c0_4 = arith.constant 0 : index
    %3 = vector.load %arg2[%c0_3, %c0_4] : memref<1x2xf32, #tpu.memory_space<vmem>>, vector<1x2xf32>
    %4 = vector.broadcast %3 : vector<1x2xf32> to vector<8x2xf32>
    %5 = arith.addf %2, %4 : vector<8x2xf32>
    %c0_5 = arith.constant 0 : index
    %c0_6 = arith.constant 0 : index
    %6 = vector.load %arg3[%c0_5, %c0_6] : memref<8x2xf32, #tpu.memory_space<vmem>>, vector<8x2xf32>
    tpu.vector_store %arg3[%c0_5, %c0_6], %5 {strides = array<i32>} : memref<8x2xf32, #tpu.memory_space<vmem>>, vector<8x2xf32>,
    return
  }
}

</mosaic_0001>

<bundles_post_ra>
// kernel: tpu_custom_call.1
= control target key start
LH: loop header
LB: loop body
LE: loop exit
PB: predicated region body
PF: predicated region fallthrough
CT: control target
= control target key end

     0   :  { %v186_v0 = vmov 0.0|0.0   ;;  %vm187_vm0 = vmmov 0   ;;  %v188_v4 = vmov 0.0   ;;  %vm39_vm1 = vcmask 1043456   ;;  %s257_s1 = inlined_call_operand.vmem [shape: f32[100,2], index: 1, kind: input, shape index: {}]   ;;  %s258_s0 = inlined_call_operand.vmem [shape: f32[8,100], index: 0, kind: input, shape index: {}]   ;;  %s259_s2 = inlined_call_operand.vmem [shape: f32[1,2], index: 2, kind: input, shape index: {}]   ;;  %s260_s3 = inlined_call_operand.vmem [shape: f32[8,2], index: 3, kind: output, shape index: {}]  }
   0x1   :  { %165 = vmatprep.subr.bf16.mxu0 %v186_v0  ;;  %v15_v1 = vld [vmem:[%s257_s1] sm:$0xff]  ;;  %v16_v2 = vld [vmem:[%s257_s1 + $0x8] sm:$0xff]  ;;  %v17_v3 = vld [vmem:[%s257_s1 + $0x10] sm:$0xff]  ;;  %162 = vmatprep.mubr.msk.f32.mxu0 %vm187_vm0, %v188_v4  ;;  %vm35_vm2 = vcmask 818176   ;;  %vm113_vm3 = vcmask 15360  }
   0x2   :  { %v166_v5 = vpack.c.bf16 %v16_v2, %v15_v1  ;;  %v18_v6 = vld [vmem:[%s257_s1 + $0x18] sm:$0xff]  ;;  %v19_v8 = vld [vmem:[%s257_s1 + $0x20] sm:$0xff]  ;;  %v20_v9 = vld [vmem:[%s257_s1 + $0x28] sm:$0xff] }
   0x3   :  { %v169_v7 = vpack.c.bf16 %v18_v6, %v17_v3  ;;  %v172_v10 = vpack.c.bf16 %v20_v9, %v19_v8  ;;  %v21_v11 = vld [vmem:[%s257_s1 + $0x30] sm:$0xff]  ;;  %v22_v12 = vld [vmem:[%s257_s1 + $0x38] sm:$0xff]  ;;  %v23_v14 = vld [vmem:[%s257_s1 + $0x40] sm:$0xff] }
   0x4   :  { %167 = vmatpush3.bf16.msra.mxu0 %v166_v5  ;;  %v175_v13 = vpack.c.bf16 %v22_v12, %v21_v11  ;;  %v24_v15 = vld [vmem:[%s257_s1 + $0x48] sm:$0xff]  ;;  %v25_v17 = vld [vmem:[%s257_s1 + $0x50] sm:$0xff]  ;;  %v26_v18 = vld [vmem:[%s257_s1 + $0x58] sm:$0xff] }
   0x5   :  { %168 = vmatprep.subr.bf16.mxu0 %v186_v0  ;;  %v178_v16 = vpack.c.bf16 %v24_v15, %v23_v14  ;;  %v181_v19 = vpack.c.bf16 %v26_v18, %v25_v17  ;;  %v27_v20 = vld [vmem:[%s257_s1 + $0x60] sm:$0xf] }
   0x6   :  { %v14_v21 = vld [vmem:[%s258_s0] sm:$0xff] }
   0x7   :  { %v119_v22 = vld [vmem:[%s259_s2] ss:$0 sm:$0xff] }
   0x8   :  { %170 = vmatpush3.bf16.msra.mxu0 %v169_v7 }
   0x9   :  { %171 = vmatprep.subr.bf16.mxu0 %v186_v0 }
   0xc   :  { %173 = vmatpush3.bf16.msra.mxu0 %v172_v10 }
   0xd   :  { %174 = vmatprep.subr.bf16.mxu0 %v186_v0 }
  0x10   :  { %176 = vmatpush3.bf16.msra.mxu0 %v175_v13 }
  0x11   :  { %177 = vmatprep.subr.bf16.mxu0 %v186_v0 }
  0x14   :  { %179 = vmatpush3.bf16.msra.mxu0 %v178_v16 }
  0x15   :  { %180 = vmatprep.subr.bf16.mxu0 %v186_v0 }
  0x18   :  { %182 = vmatpush3.bf16.msra.mxu0 %v181_v19 }
  0x19   :  { %160 = vmatprep.subr.mxu0 %v188_v4 }
  0x1c   :  { %161 = vmatpush3.msk.msra.mxu0 %vm39_vm1, %v27_v20 }
  0x1d   :  { %163 = vmatmul.mubr.msk.f32.vlgmr.msra.gmra.mrb[0].mxu0 %vm35_vm2, %v14_v21 }
  0xf0   :  { %v109_v23 = vpop.f32.mrb[0].mxu0 }
  0xf1   :  { %v110_v24 = vadd.f32 %v119_v22, %v109_v23  ;;  %v164_v25 = vpop.f32.mrb[1].mxu0 }
  0xf3   :  { %114 = vst.msk [vmem:[%s260_s3] sm:$0xff] %vm113_vm3, %v110_v24 }

</bundles_post_ra>
